<compile_context>
chip_gen: v5e
topology: v5e:2x2
jax: 0.10.0
libtpu: 0.0.40
codegen_flags: <defaults>
</compile_context>

<pallas_src>
import jax
import jax.numpy as jnp
from jax.experimental import pallas as pl
from jax.experimental.pallas import tpu as pltpu

BN_EPS = 1e-5
LANE = 128           # TPU lane width: keep the feature axis a multiple of this
MAX_TILE_H = 512     # cap per-tile feature width (keeps VMEM footprint small)


def fx_mlp_kernel(x_ref, w_ref, gamma_ref, beta_ref, o_ref):
    # ---- Linear (bias intentionally omitted: BatchNorm cancels it exactly) ----
    h = jnp.dot(x_ref[...], w_ref[...], preferred_element_type=jnp.float32)

    # ---- BatchNorm1d, training mode, one-pass batch statistics ----
    inv_b = 1.0 / h.shape[0]
    mean = jnp.sum(h, axis=0, keepdims=True) * inv_b          # (1, TH)
    ex2 = jnp.sum(h * h, axis=0, keepdims=True) * inv_b       # (1, TH)
    var = jnp.maximum(ex2 - mean * mean, 0.0)                 # biased variance
    scale = jax.lax.rsqrt(var + BN_EPS) * gamma_ref[...]      # (1, TH), EUP rsqrt
    shift = beta_ref[...] - mean * scale                      # (1, TH)

    # ---- Affine + ReLU (single (B,TH) multiply-add on the VPU) ----
    o_ref[...] = jnp.maximum(h * scale + shift, 0.0).astype(o_ref.dtype)


def fx_mlp_forward(x, w_t, gamma, beta):
    """x: (B, D_in) f32, w_t: (D_in, H) f32, gamma/beta: (1, H) f32."""
    B, D_in = x.shape
    H = w_t.shape[1]

    # Pad the feature axis to a lane-dense multiple of 128.  Padded columns use
    # zero weights / gamma=1 / beta=0 so they normalize to 0 (no NaNs) and are
    # sliced off after the call.
    Hp = pl.cdiv(H, LANE) * LANE
    if Hp != H:
        pad = Hp - H
        w_t = jnp.pad(w_t, ((0, 0), (0, pad)))
        gamma = jnp.pad(gamma, ((0, 0), (0, pad)), constant_values=1.0)
        beta = jnp.pad(beta, ((0, 0), (0, pad)))

    # Feature tile: multiple of 128 that evenly divides the padded width.
    tile_h = min(MAX_TILE_H, Hp)
    while Hp % tile_h:
        tile_h -= LANE

    out = pl.pallas_call(
        fx_mlp_kernel,
        out_shape=jax.ShapeDtypeStruct((B, Hp), jnp.float32),
        grid_spec=pltpu.PrefetchScalarGridSpec(
            num_scalar_prefetch=0,
            grid=(Hp // tile_h,),
            in_specs=[
                # x stays resident across all feature tiles (full batch ->
                # exact per-feature batch statistics in every tile).
                pl.BlockSpec((B, D_in), lambda j: (0, 0)),
                pl.BlockSpec((D_in, tile_h), lambda j: (0, j)),
                pl.BlockSpec((1, tile_h), lambda j: (0, j)),
                pl.BlockSpec((1, tile_h), lambda j: (0, j)),
            ],
            out_specs=pl.BlockSpec((B, tile_h), lambda j: (0, j)),
        ),
        compiler_params=pltpu.CompilerParams(
            dimension_semantics=("parallel",)),
    )(x, w_t, gamma, beta)

    return out[:, :H] if Hp != H else out


def reference_forward(x, w_t, bias, gamma, beta):
    """Pure-JAX reference matching the PyTorch module (training-mode BN),
    *including* the Linear bias — verifies the bias-drop is equivalent."""
    h = x @ w_t + bias
    mean = h.mean(axis=0, keepdims=True)
    var = ((h - mean) ** 2).mean(axis=0, keepdims=True)  # biased, like torch BN
    y = (h - mean) / jnp.sqrt(var + BN_EPS) * gamma + beta
    return jnp.maximum(y, 0.0)


if __name__ == "__main__":
    # Small shapes consistent with the module: batch=8, input_dim=32, h_dim=64
    B, D_IN, H = 8, 32, 64
    key = jax.random.PRNGKey(0)
    kx, kw, kb = jax.random.split(key, 3)

    x = jax.random.normal(kx, (B, D_IN), dtype=jnp.float32)

    # Deterministic parameter init (mimics torch Linear's uniform(-1/sqrt(fan_in), ...))
    bound = 1.0 / (D_IN ** 0.5)
    w_t = jax.random.uniform(kw, (D_IN, H), minval=-bound, maxval=bound,
                             dtype=jnp.float32)
    bias = jax.random.uniform(kb, (1, H), minval=-bound, maxval=bound,
                              dtype=jnp.float32)   # only used by the reference
    gamma = jnp.ones((1, H), dtype=jnp.float32)    # BatchNorm1d default weight
    beta = jnp.zeros((1, H), dtype=jnp.float32)    # BatchNorm1d default bias

    out = fx_mlp_forward(x, w_t, gamma, beta)
    out = jax.block_until_ready(out)

    ref = reference_forward(x, w_t, bias, gamma, beta)
    assert out.shape == (B, H)
    assert jnp.allclose(out, ref, atol=1e-4, rtol=1e-4), "mismatch vs reference"

    print("KERNEL_OK")
</pallas_src>

<mosaic_0001>
module attributes {stable_mosaic.version = 11 : i64} {
  func.func @fx_mlp_kernel(%arg0: i32, %arg1: memref<8x32xf32, #tpu.memory_space<vmem>>, %arg2: memref<32x128xf32, #tpu.memory_space<vmem>>, %arg3: memref<1x128xf32, #tpu.memory_space<vmem>>, %arg4: memref<1x128xf32, #tpu.memory_space<vmem>>, %arg5: memref<8x128xf32, #tpu.memory_space<vmem>>) attributes {dimension_semantics = [#tpu.dimension_semantics<parallel>], iteration_bounds = array<i64: 1>, scalar_prefetch = 0 : i64, scratch_operands = 0 : i64, tpu.core_type = #tpu.core_type<tc>, window_params = [{pipeline_mode = #tpu.pipeline_mode<synchronous>, transform_indices = @transform_0, window_bounds = array<i64: 8, 32>}, {transform_indices = @transform_1, window_bounds = array<i64: 32, 128>}, {transform_indices = @transform_2, window_bounds = array<i64: 1, 128>}, {transform_indices = @transform_3, window_bounds = array<i64: 1, 128>}, {transform_indices = @transform_4, window_bounds = array<i64: 8, 128>}]} {
    %c0 = arith.constant 0 : index
    %c0_0 = arith.constant 0 : index
    %0 = vector.load %arg1[%c0, %c0_0] : memref<8x32xf32, #tpu.memory_space<vmem>>, vector<8x32xf32>
    %c0_1 = arith.constant 0 : index
    %c0_2 = arith.constant 0 : index
    %1 = vector.load %arg2[%c0_1, %c0_2] : memref<32x128xf32, #tpu.memory_space<vmem>>, vector<32x128xf32>
    %cst = arith.constant dense<0.000000e+00> : vector<8x128xf32>
    %2 = tpu.matmul %0, %1, %cst {dimension_numbers = #tpu.dot_dimension_numbers<[1], [0], [0], [1], [0, 0, 1, 1], [], []>} : vector<8x32xf32>, vector<32x128xf32>, vector<8x128xf32> -> vector<8x128xf32>
    %cst_3 = arith.constant dense<0.000000e+00> : vector<128xf32>
    %3 = vector.multi_reduction <add>, %2, %cst_3 [0] : vector<8x128xf32> to vector<128xf32>
    %4 = vector.shape_cast %3 : vector<128xf32> to vector<1x128xf32>
    %cst_4 = arith.constant 1.250000e-01 : f32
    %5 = vector.broadcast %cst_4 : f32 to vector<1x128xf32>
    %6 = arith.mulf %4, %5 : vector<1x128xf32>
    %7 = arith.mulf %2, %2 : vector<8x128xf32>
    %cst_5 = arith.constant dense<0.000000e+00> : vector<128xf32>
    %8 = vector.multi_reduction <add>, %7, %cst_5 [0] : vector<8x128xf32> to vector<128xf32>
    %9 = vector.shape_cast %8 : vector<128xf32> to vector<1x128xf32>
    %cst_6 = arith.constant 1.250000e-01 : f32
    %10 = vector.broadcast %cst_6 : f32 to vector<1x128xf32>
    %11 = arith.mulf %9, %10 : vector<1x128xf32>
    %12 = arith.mulf %6, %6 : vector<1x128xf32>
    %13 = arith.subf %11, %12 : vector<1x128xf32>
    %cst_7 = arith.constant 0.000000e+00 : f32
    %14 = vector.broadcast %cst_7 : f32 to vector<1x128xf32>
    %15 = arith.maximumf %13, %14 : vector<1x128xf32>
    %cst_8 = arith.constant 9.99999974E-6 : f32
    %16 = vector.broadcast %cst_8 : f32 to vector<1x128xf32>
    %17 = arith.addf %15, %16 : vector<1x128xf32>
    %18 = math.rsqrt %17 : vector<1x128xf32>
    %c0_9 = arith.constant 0 : index
    %c0_10 = arith.constant 0 : index
    %19 = vector.load %arg3[%c0_9, %c0_10] : memref<1x128xf32, #tpu.memory_space<vmem>>, vector<1x128xf32>
    %20 = arith.mulf %18, %19 : vector<1x128xf32>
    %c0_11 = arith.constant 0 : index
    %c0_12 = arith.constant 0 : index
    %21 = vector.load %arg4[%c0_11, %c0_12] : memref<1x128xf32, #tpu.memory_space<vmem>>, vector<1x128xf32>
    %22 = arith.mulf %6, %20 : vector<1x128xf32>
    %23 = arith.subf %21, %22 : vector<1x128xf32>
    %24 = vector.broadcast %20 : vector<1x128xf32> to vector<8x128xf32>
    %25 = arith.mulf %2, %24 : vector<8x128xf32>
    %26 = vector.broadcast %23 : vector<1x128xf32> to vector<8x128xf32>
    %27 = arith.addf %25, %26 : vector<8x128xf32>
    %cst_13 = arith.constant 0.000000e+00 : f32
    %28 = vector.broadcast %cst_13 : f32 to vector<8x128xf32>
    %29 = arith.maximumf %27, %28 : vector<8x128xf32>
    %c0_14 = arith.constant 0 : index
    %c0_15 = arith.constant 0 : index
    %30 = vector.load %arg5[%c0_14, %c0_15] : memref<8x128xf32, #tpu.memory_space<vmem>>, vector<8x128xf32>
    tpu.vector_store %arg5[%c0_14, %c0_15], %29 {strides = array<i32>} : memref<8x128xf32, #tpu.memory_space<vmem>>, vector<8x128xf32>,
    return
  }
  func.func @transform_0(%arg0: i32) -> (i32, i32) {
    %c0_i32 = arith.constant 0 : i32
    %c0_i32_0 = arith.constant 0 : i32
    %c0_i32_1 = arith.constant 0 : i32
    return %c0_i32, %c0_i32_0 : i32, i32
  }
  func.func @transform_1(%arg0: i32) -> (i32, i32) {
    %c0_i32 = arith.constant 0 : i32
    %c0_i32_0 = arith.constant 0 : i32
    return %c0_i32, %arg0 : i32, i32
  }
  func.func @transform_2(%arg0: i32) -> (i32, i32) {
    %c0_i32 = arith.constant 0 : i32
    %c0_i32_0 = arith.constant 0 : i32
    return %c0_i32, %arg0 : i32, i32
  }
  func.func @transform_3(%arg0: i32) -> (i32, i32) {
    %c0_i32 = arith.constant 0 : i32
    %c0_i32_0 = arith.constant 0 : i32
    return %c0_i32, %arg0 : i32, i32
  }
  func.func @transform_4(%arg0: i32) -> (i32, i32) {
    %c0_i32 = arith.constant 0 : i32
    %c0_i32_0 = arith.constant 0 : i32
    return %c0_i32, %arg0 : i32, i32
  }
}

</mosaic_0001>

<bundles_post_ra>
// kernel: tpu_custom_call.1
= control target key start
LH: loop header
LB: loop body
LE: loop exit
PB: predicated region body
PF: predicated region fallthrough
CT: control target
= control target key end

     0   :  { %9 = vsyncpa [#allocation3], 0  ;;  %s268_s0 = inlined_call_operand.hbm [shape: f32[8,32], index: 0, kind: input, shape index: {}]   ;;  %s269_s1 = inlined_call_operand.hbm [shape: f32[32,128], index: 1, kind: input, shape index: {}]   ;;  %s270_s2 = inlined_call_operand.vmem [shape: f32[1,128], index: 2, kind: input, shape index: {}]   ;;  %s271_s3 = inlined_call_operand.vmem [shape: f32[1,128], index: 3, kind: input, shape index: {}]   ;;  %s272_s4 = inlined_call_operand.hbm [shape: f32[8,128], index: 4, kind: output, shape index: {}]  }
   0x1   :  { %10 = vsyncpa [#allocation6], 0 }
   0x2   :  { %11 = vsyncpa [#allocation4], 0  ;;  %s17_s17 = sshll.u32 %s268_s0, 4  ;;  %s223_s18 = smov [#allocation2]   ;;  %s18_s17 = int_to_ptr.hbm [resolvable:$true] %s17_s17 }
   0x3   :  { %s19_s19 = sshll.u32 %s223_s18, 4  ;;  %s27_s22 = sshll.u32 %s269_s1, 4  ;;  %s20_s19 = int_to_ptr.vmem [resolvable:$true] %s19_s19  ;;  %s28_s22 = int_to_ptr.hbm [resolvable:$true] %s27_s22 }
   0x4   :  { %22 = dma.hbm_to_vmem [thread:$0]  %s18_s17, 128, %s20_s19, [#allocation3]  }
   0x5   :  { %s224_s23 = smov [#allocation5]   ;;  %s225_s25 = smov 128  }
   0x6   :  { %s29_s24 = sshll.u32 %s224_s23, 4  ;;  %s226_s26 = smov 8   ;;  %s30_s24 = int_to_ptr.vmem [resolvable:$true] %s29_s24 }
   0x7   :  { %35 = dma.hbm_to_vmem [thread:$0]  %s28_s22, 512, %s30_s24, [#allocation6], %s225_s25, %s225_s25, %s226_s26  }
   0x8   :  { %217 = dma.done.wait [#allocation3], 128  }
   0x9   :  { %218 = vsyncadd [#allocation3], 4294967168 }
   0xa   :  { %219 = dma.done.wait [#allocation6], 512  }
   0xb   :  { %220 = vsyncadd [#allocation6], 4294966784  ;;  %v52_v0 = vld [vmem:[#allocation5 + $0x18] sm:$0xff]  ;;  %v51_v1 = vld [vmem:[#allocation5 + $0x10] sm:$0xff]  ;;  %vm53_vm0 = vcmask 261120   ;;  %s227_s29 = smov [#allocation7]  }
   0xc   :  { %69 = vmatpush.msra.mxu0 %v52_v0  ;;  %v50_v2 = vld [vmem:[#allocation5 + $0x8] sm:$0xff]  ;;  %v49_v3 = vld [vmem:[#allocation5] sm:$0xff]  ;;  %v48_v4 = vld [vmem:[#allocation2] sm:$0xff]  ;;  %s124_s30 = sshll.u32 %s227_s29, 4  ;;  %s126_s7 = sshll.u32 %s272_s4, 4  ;;  %s125_s30 = int_to_ptr.vmem [resolvable:$true] %s124_s30  ;;  %s127_s7 = int_to_ptr.hbm [resolvable:$true] %s126_s7 }
   0xd   :  { %v106_v31 = vld [vmem:[%s270_s2] sm:$0x1] }
   0xe   :  { %70 = vmatpush.msra.mxu0 %v51_v1  ;;  %v108_v34 = vld [vmem:[%s271_s3] sm:$0x1] }
  0x10   :  { %71 = vmatpush.msra.mxu0 %v50_v2 }
  0x12   :  { %72 = vmatpush.msra.mxu0 %v49_v3 }
  0x13   :  { %137 = vmatmul.msk.f32.vlgmr.msra.gmra.mxu0 %vm53_vm0, %v48_v4 }
  0x90   :  { %v74_v5 = vpop.f32.mrf.mxu0 }
  0x91   :  { %v77_v6 = vrot.slane %v74_v5, 4  ;;  %v84_v7 = vmul.f32 %v74_v5, %v74_v5 }
  0x93   :  { %v78_v8 = vadd.f32 %v77_v6, %v74_v5  ;;  %v85_v9 = vrot.slane %v84_v7, 4 }
  0x95   :  { %v79_v10 = vrot.slane %v78_v8, 2  ;;  %v86_v11 = vadd.f32 %v85_v9, %v84_v7 }
  0x97   :  { %v80_v12 = vadd.f32 %v79_v10, %v78_v8  ;;  %v87_v13 = vrot.slane %v86_v11, 2 }
  0x99   :  { %v81_v14 = vrot.slane %v80_v12, 1  ;;  %v88_v15 = vadd.f32 %v87_v13, %v86_v11 }
  0x9b   :  { %v82_v16 = vadd.f32 %v81_v14, %v80_v12  ;;  %v89_v17 = vrot.slane %v88_v15, 1 }
  0x9d   :  { %v83_v18 = vmul.f32 0.125, %v82_v16  ;;  %v90_v19 = vadd.f32 %v89_v17, %v88_v15 }
  0x9f   :  { %v91_v20 = vmul.f32 0.125, %v90_v19  ;;  %v92_v21 = vmul.f32 %v83_v18, %v83_v18 }
  0xa1   :  { %v93_v22 = vsub.f32 %v91_v20, %v92_v21 }
  0xa3   :  { %v94_v23 = vmax.f32 %v93_v22, 0.0 }
  0xa5   :  { %v95_v24 = vadd.f32 1e-05, %v94_v23 }
  0xa7   :  { %143 = vrsqrt.f32 %v95_v24  ;;  %vm102_vm2 = vweird.f32 %v95_v24 }
  0xad   :  { %v144_v25 = vpop.eup %143 }
  0xae   :  { %v97_v26 = vmul.f32 %v144_v25, %v95_v24  ;;  %vm103_vm1 = vweird.f32 %v144_v25 }
  0xaf   :  { %vm104_vm3 = vmor %vm102_vm2, %vm103_vm1 }
  0xb0   :  { %v98_v27 = vmul.f32 %v144_v25, %v97_v26 }
  0xb2   :  { %v99_v28 = vmul.f32 0.5, %v98_v27 }
  0xb4   :  { %v100_v29 = vsub.f32 1.5, %v99_v28 }
  0xb6   :  { %v101_v30 = vmul.f32 %v144_v25, %v100_v29 }
  0xb8   :  { %v105_v32 = vsel %vm104_vm3, %v144_v25, %v101_v30 }
  0xb9   :  { %v107_v33 = vmul.f32 %v106_v31, %v105_v32 }
  0xbb   :  { %v109_v35 = vmul.f32 %v107_v33, %v83_v18  ;;  %v111_v36 = vperm.slane %v107_v33, 0 }
  0xbd   :  { %v110_v37 = vsub.f32 %v108_v34, %v109_v35  ;;  %v112_v38 = vmul.f32 %v111_v36, %v74_v5 }
  0xbf   :  { %v114_v39 = vperm.slane %v110_v37, 0 }
  0xc1   :  { %v116_v40 = vadd.f32 %v114_v39, %v112_v38 }
  0xc3   :  { %v117_v41 = vmax.f32 %v116_v40, 0.0 }
  0xc5   :  { %118 = vst [vmem:[#allocation7] sm:$0xff] %v117_v41 }
  0xc6   :  { %129 = dma.vmem_to_hbm [thread:$0]  %s125_s30, 128, %s127_s7, [#allocation4]  }
  0xc7   :  { %221 = dma.done.wait [#allocation4], 128  }
  0xc8   :  { %222 = vsyncadd [#allocation4], 4294967168 }
  0xc9   :  { %134 = vsyncpa [#allocation3], 1 }
  0xca   :  { %135 = vsyncpa [#allocation6], 1 }
  0xcb   :  { %136 = vsyncpa [#allocation4], 1 }

</bundles_post_ra>
